<compile_context>
chip_gen: v6e
topology: v6e:2x2x1
jax: 0.10.0
libtpu: 0.0.40
codegen_flags: <defaults>
</compile_context>

<pallas_src>
import jax
import jax.numpy as jnp
from jax.experimental import pallas as pl
from jax.experimental.pallas import tpu as pltpu


def _make_fusion_kernel(n, channel_counts=None, out_channels=None):
    """Kernel: out = sum_i w[i] * feat_i, accumulated in f32.

    channel_counts/out_channels are only used by the mixed-channel (3-D) path,
    where feature i may cover only the first channel_counts[i] channels of the
    output block (static slice accumulate).
    """

    def kernel(w_ref, *refs):
        feat_refs = refs[:n]
        out_ref = refs[n]
        # Hoist SMEM scalar reads out of the unrolled loop.
        ws = [w_ref[i] for i in range(n)]
        acc = feat_refs[0][...].astype(jnp.float32) * ws[0]
        for i in range(1, n):
            contrib = feat_refs[i][...].astype(jnp.float32) * ws[i]
            if channel_counts is None or channel_counts[i] == out_channels:
                acc = acc + contrib
            else:
                ci = channel_counts[i]  # static
                acc = acc.at[:, :ci, :].add(contrib)
        out_ref[...] = acc.astype(out_ref.dtype)

    return kernel


def _fuse_equal_channels(flat_feats, weights, *, target_block_bytes=1 << 20):
    """flat_feats: list of n (R, L) arrays (same shape); weights: (n,) f32."""
    n = len(flat_feats)
    R, L = flat_feats[0].shape
    out_dtype = flat_feats[0].dtype
    bpe = max(jnp.dtype(f.dtype).itemsize for f in flat_feats)

    # Row tile: full spatial extent (L) as lanes, ~1 MiB per input block,
    # multiple of 8 sublanes (or the full row extent, which is always legal).
    rows = max(1, target_block_bytes // max(1, L * bpe))
    if rows >= R:
        tr = R
    else:
        tr = min(R, max(8, (rows // 8) * 8))
    grid = (pl.cdiv(R, tr),)

    kernel = _make_fusion_kernel(n)
    return pl.pallas_call(
        kernel,
        out_shape=jax.ShapeDtypeStruct((R, L), out_dtype),
        grid_spec=pltpu.PrefetchScalarGridSpec(
            num_scalar_prefetch=1,  # weights land in SMEM
            grid=grid,
            in_specs=[pl.BlockSpec((tr, L), lambda i, w: (i, 0))
                      for _ in range(n)],
            out_specs=pl.BlockSpec((tr, L), lambda i, w: (i, 0)),
        ),
        compiler_params=pltpu.CompilerParams(
            dimension_semantics=("parallel",),
            vmem_limit_bytes=32 * 1024 * 1024,
        ),
    )(weights, *flat_feats)


def _fuse_mixed_channels(feats3, weights, chans, nx):
    """feats3: list of (N, C_i, HW) arrays; feature i adds onto channels [0, C_i)."""
    n = len(feats3)
    N = feats3[0].shape[0]
    HW = feats3[0].shape[2]
    out_dtype = feats3[0].dtype

    # TODO(synk): for very large C*HW a per-batch block may exceed scoped VMEM;
    # a channel-tiled variant with per-feature masking would be needed there.
    kernel = _make_fusion_kernel(n, channel_counts=tuple(chans), out_channels=nx)
    in_specs = [pl.BlockSpec((1, int(c), HW), lambda b, w: (b, 0, 0))
                for c in chans]
    return pl.pallas_call(
        kernel,
        out_shape=jax.ShapeDtypeStruct((N, nx, HW), out_dtype),
        grid_spec=pltpu.PrefetchScalarGridSpec(
            num_scalar_prefetch=1,
            grid=(N,),
            in_specs=in_specs,
            out_specs=pl.BlockSpec((1, nx, HW), lambda b, w: (b, 0, 0)),
        ),
        compiler_params=pltpu.CompilerParams(
            dimension_semantics=("parallel",),
            vmem_limit_bytes=32 * 1024 * 1024,
        ),
    )(weights, *feats3)


class WeightedFeatureFusion:
    """JAX/Pallas port of yolov3 WeightedFeatureFusion."""

    def __init__(self, layers, weight=False):
        self.layers = layers
        self.weight = weight
        self.n = len(layers) + 1
        if weight:
            # matches nn.Parameter(torch.zeros(self.n))
            self.w = jnp.zeros((self.n,), dtype=jnp.float32)

    def __call__(self, x, outputs):
        # x: (N, C, H, W); outputs: list of (N, Ci, H, W)
        if self.weight:
            w = jax.nn.sigmoid(self.w.astype(jnp.float32)) * (2.0 / self.n)
        else:
            w = jnp.ones((self.n,), dtype=jnp.float32)

        N, nx, H, W = x.shape
        feats, chans = [x], [nx]
        for i in range(self.n - 1):
            a = outputs[self.layers[i]]
            na = a.shape[1]
            if na <= nx:
                feats.append(a)
                chans.append(na)
            else:
                # TODO(synk): PyTorch branch `x = x + a[:, nx]` relies on an
                # NCHW-vs-HW broadcasting quirk (likely a latent upstream bug);
                # not reproduced here.
                raise NotImplementedError("nx < na branch not supported")

        HW = H * W
        if all(c == nx for c in chans):
            flat = [f.reshape(N * nx, HW) for f in feats]   # free reshapes
            fused = _fuse_equal_channels(flat, w)
        else:
            f3 = [f.reshape(N, c, HW) for f, c in zip(feats, chans)]
            fused = _fuse_mixed_channels(f3, w, chans, nx)
        return fused.reshape(N, nx, H, W)


if __name__ == "__main__":
    key = jax.random.PRNGKey(0)
    k0, k1, k2, k3 = jax.random.split(key, 4)

    N, C, H, W = 2, 4, 16, 16
    x = jax.random.normal(k0, (N, C, H, W), dtype=jnp.float32)
    out_a = jax.random.normal(k1, (N, C, H, W), dtype=jnp.float32)
    out_b = jax.random.normal(k2, (N, C, H, W), dtype=jnp.float32)
    outputs = [out_b, out_a, x]  # pretend layer-output history

    # --- equal-channel path (weight=True) ---
    module = WeightedFeatureFusion(layers=[-2, -3], weight=True)
    y = jax.block_until_ready(module(x, outputs))
    w = jax.nn.sigmoid(module.w) * (2.0 / module.n)
    ref = x * w[0] + outputs[-2] * w[1] + outputs[-3] * w[2]
    assert y.shape == (N, C, H, W)
    assert y.dtype == x.dtype
    assert jnp.allclose(y, ref, atol=1e-5, rtol=1e-5)

    # --- bf16 inputs stay bf16 in HBM, f32 accumulation inside the kernel ---
    xb = x.astype(jnp.bfloat16)
    outs_b = [o.astype(jnp.bfloat16) for o in outputs]
    yb = jax.block_until_ready(module(xb, outs_b))
    refb = (xb.astype(jnp.float32) * w[0]
            + outs_b[-2].astype(jnp.float32) * w[1]
            + outs_b[-3].astype(jnp.float32) * w[2]).astype(jnp.bfloat16)
    assert yb.dtype == jnp.bfloat16
    assert jnp.allclose(yb.astype(jnp.float32), refb.astype(jnp.float32),
                        atol=2e-2, rtol=2e-2)

    # --- mismatched channels (nx > na): no padding, in-kernel partial add ---
    a_small = jax.random.normal(k3, (N, 2, H, W), dtype=jnp.float32)
    module2 = WeightedFeatureFusion(layers=[-1], weight=True)
    y2 = jax.block_until_ready(module2(x, [a_small]))
    w2 = jax.nn.sigmoid(module2.w) * (2.0 / module2.n)
    ref2 = (x * w2[0]).at[:, :2].add(a_small * w2[1])
    assert jnp.allclose(y2, ref2, atol=1e-5, rtol=1e-5)

    print("KERNEL_OK")
</pallas_src>

<mosaic_0001>
module attributes {stable_mosaic.version = 11 : i64} {
  func.func @kernel(%arg0: i32, %arg1: memref<3xf32, #tpu.memory_space<smem>>, %arg2: memref<8x256xf32, #tpu.memory_space<vmem>>, %arg3: memref<8x256xf32, #tpu.memory_space<vmem>>, %arg4: memref<8x256xf32, #tpu.memory_space<vmem>>, %arg5: memref<8x256xf32, #tpu.memory_space<vmem>>) attributes {dimension_semantics = [#tpu.dimension_semantics<parallel>], iteration_bounds = array<i64: 1>, scalar_prefetch = 1 : i64, scratch_operands = 0 : i64, tpu.core_type = #tpu.core_type<tc>, window_params = [{transform_indices = @transform_0, window_bounds = array<i64: 8, 256>}, {transform_indices = @transform_1, window_bounds = array<i64: 8, 256>}, {transform_indices = @transform_2, window_bounds = array<i64: 8, 256>}, {transform_indices = @transform_3, window_bounds = array<i64: 8, 256>}]} {
    %c0 = arith.constant 0 : index
    %0 = memref.load %arg1[%c0] : memref<3xf32, #tpu.memory_space<smem>>
    %c1 = arith.constant 1 : index
    %1 = memref.load %arg1[%c1] : memref<3xf32, #tpu.memory_space<smem>>
    %c2 = arith.constant 2 : index
    %2 = memref.load %arg1[%c2] : memref<3xf32, #tpu.memory_space<smem>>
    %c0_0 = arith.constant 0 : index
    %c0_1 = arith.constant 0 : index
    %3 = vector.load %arg2[%c0_0, %c0_1] : memref<8x256xf32, #tpu.memory_space<vmem>>, vector<8x256xf32>
    %4 = vector.broadcast %0 : f32 to vector<8x256xf32>
    %5 = arith.mulf %3, %4 : vector<8x256xf32>
    %c0_2 = arith.constant 0 : index
    %c0_3 = arith.constant 0 : index
    %6 = vector.load %arg3[%c0_2, %c0_3] : memref<8x256xf32, #tpu.memory_space<vmem>>, vector<8x256xf32>
    %7 = vector.broadcast %1 : f32 to vector<8x256xf32>
    %8 = arith.mulf %6, %7 : vector<8x256xf32>
    %9 = arith.addf %5, %8 : vector<8x256xf32>
    %c0_4 = arith.constant 0 : index
    %c0_5 = arith.constant 0 : index
    %10 = vector.load %arg4[%c0_4, %c0_5] : memref<8x256xf32, #tpu.memory_space<vmem>>, vector<8x256xf32>
    %11 = vector.broadcast %2 : f32 to vector<8x256xf32>
    %12 = arith.mulf %10, %11 : vector<8x256xf32>
    %13 = arith.addf %9, %12 : vector<8x256xf32>
    %c0_6 = arith.constant 0 : index
    %c0_7 = arith.constant 0 : index
    %14 = vector.load %arg5[%c0_6, %c0_7] : memref<8x256xf32, #tpu.memory_space<vmem>>, vector<8x256xf32>
    tpu.vector_store %arg5[%c0_6, %c0_7], %13 {strides = array<i32>} : memref<8x256xf32, #tpu.memory_space<vmem>>, vector<8x256xf32>,
    return
  }
  func.func @transform_0(%arg0: i32, %arg1: memref<3xf32, #tpu.memory_space<smem>>) -> (i32, i32) {
    %c0_i32 = arith.constant 0 : i32
    %c0_i32_0 = arith.constant 0 : i32
    return %arg0, %c0_i32 : i32, i32
  }
  func.func @transform_1(%arg0: i32, %arg1: memref<3xf32, #tpu.memory_space<smem>>) -> (i32, i32) {
    %c0_i32 = arith.constant 0 : i32
    %c0_i32_0 = arith.constant 0 : i32
    return %arg0, %c0_i32 : i32, i32
  }
  func.func @transform_2(%arg0: i32, %arg1: memref<3xf32, #tpu.memory_space<smem>>) -> (i32, i32) {
    %c0_i32 = arith.constant 0 : i32
    %c0_i32_0 = arith.constant 0 : i32
    return %arg0, %c0_i32 : i32, i32
  }
  func.func @transform_3(%arg0: i32, %arg1: memref<3xf32, #tpu.memory_space<smem>>) -> (i32, i32) {
    %c0_i32 = arith.constant 0 : i32
    %c0_i32_0 = arith.constant 0 : i32
    return %arg0, %c0_i32 : i32, i32
  }
}

</mosaic_0001>

<bundles_post_ra>
// kernel: tpu_custom_call.1
= control target key start
LH: loop header
LB: loop body
LE: loop exit
PB: predicated region body
PF: predicated region fallthrough
CT: control target
= control target key end

     0   :  { %s198_s15 = smov [#allocation3]   ;;  %s243_s0 = inlined_call_operand.hbm [shape: f32[3], index: 0, kind: input, shape index: {}]   ;;  %s244_s1 = inlined_call_operand.hbm [shape: f32[8,256], index: 1, kind: input, shape index: {}]   ;;  %s245_s2 = inlined_call_operand.hbm [shape: f32[8,256], index: 2, kind: input, shape index: {}]   ;;  %s246_s3 = inlined_call_operand.hbm [shape: f32[8,256], index: 3, kind: input, shape index: {}]   ;;  %s247_s4 = inlined_call_operand.hbm [shape: f32[8,256], index: 4, kind: output, shape index: {}]  }
   0x1   :  { %10 = dma.hbm_to_smem %s243_s0, 16, %s198_s15, [#allocation2] }
   0x2   :  { %190 = dma.done.wait [#allocation2], 16 }
   0x3   :  { %191 = vsyncadd [#allocation2], 4294967280 }
   0x4   :  { %12 = sfence }
   0x5   :  { %13 = vsyncpa [#allocation5], 0 }
   0x6   :  { %14 = vsyncpa [#allocation8], 0 }
   0x7   :  { %15 = vsyncpa [#allocation6], 0  ;;  %s199_s18 = smov [#allocation7]   ;;  %s200_s20 = smov [#allocation4]  }
   0x8   :  { %s32_s19 = sshll.u32 %s199_s18, 4  ;;  %s22_s21 = sshll.u32 %s200_s20, 4  ;;  %s33_s19 = int_to_ptr.vmem [resolvable:$true] %s32_s19  ;;  %s23_s21 = int_to_ptr.vmem [resolvable:$true] %s22_s21 }
   0x9   :  { %s118_s22 = scalar_lea.vmem %s33_s19, 256  ;;  %p123_p1 = scmp.lt.s32.totalorder %s33_s19, %s33_s19 }
   0xa   :  { %p119_p0 = scmp.ne.s32.totalorder %s33_s19, %s118_s22  ;;  %p124_p2 = scmp.lt.s32.totalorder %s118_s22, %s118_s22 }
   0xc   :  { %p125_p3 = por %p124_p2, %p123_p1 }
   0xe   :  { %p126_p4 = pnand %p125_p3, %p119_p0 }
  0x10   :  { %129 = shalt.err (!%p126_p4)
}
  0x11   :  { %35 = dma.hbm_to_vmem [thread:$0]  %s245_s2, 256, %s33_s19, [#allocation8]  }
  0x12   :  { %s138_s24 = scalar_lea.vmem %s23_s21, 256  ;;  %p143_p6 = scmp.lt.s32.totalorder %s23_s21, %s23_s21 }
  0x13   :  { %p139_p5 = scmp.ne.s32.totalorder %s23_s21, %s138_s24  ;;  %p144_p7 = scmp.lt.s32.totalorder %s138_s24, %s138_s24 }
  0x15   :  { %p145_p8 = por %p144_p7, %p143_p6 }
  0x17   :  { %p146_p9 = pnand %p145_p8, %p139_p5 }
  0x19   :  { %149 = shalt.err (!%p146_p9)
}
  0x1a   :  { %25 = dma.hbm_to_vmem [thread:$0]  %s244_s1, 256, %s23_s21, [#allocation5]  }
  0x1b   :  { %s201_s27 = smov [#allocation9]  }
  0x1c   :  { %s42_s28 = sshll.u32 %s201_s27, 4  ;;  %s43_s28 = int_to_ptr.vmem [resolvable:$true] %s42_s28 }
  0x1d   :  { %s158_s29 = scalar_lea.vmem %s43_s28, 256  ;;  %p163_p11 = scmp.lt.s32.totalorder %s43_s28, %s43_s28 }
  0x1e   :  { %p159_p10 = scmp.ne.s32.totalorder %s43_s28, %s158_s29  ;;  %p164_p12 = scmp.lt.s32.totalorder %s158_s29, %s158_s29 }
  0x20   :  { %p165_p13 = por %p164_p12, %p163_p11 }
  0x22   :  { %p166_p0 = pnand %p165_p13, %p159_p10 }
  0x24   :  { %169 = shalt.err (!%p166_p0)
}
  0x25   :  { %45 = dma.hbm_to_vmem [thread:$0]  %s246_s3, 256, %s43_s28, [#allocation8]  }
  0x26   :  { %192 = dma.done.wait [#allocation5], 256  }
  0x27   :  { %193 = vsyncadd [#allocation5], 4294967040 }
  0x28   :  { %194 = dma.done.wait [#allocation8], 512  }
  0x29   :  { %195 = vsyncadd [#allocation8], 4294966784  ;;  %s55_s5 = sld [smem:[#allocation3]]  ;;  %v58_v0 = vld [vmem:[#allocation4] sm:$0xff]  ;;  %v63_v2 = vld [vmem:[#allocation7] sm:$0xff]  ;;  %s202_s3 = smov [#allocation10]  }
  0x2a   :  { %s95_s1 = sld [smem:[#allocation3 + $0x1]]  ;;  %v70_v3 = vld [vmem:[#allocation9] sm:$0xff]  ;;  %v59_v6 = vld [vmem:[#allocation4 + $0x8] sm:$0xff]  ;;  %v64_v7 = vld [vmem:[#allocation7 + $0x8] sm:$0xff]  ;;  %s85_s7 = sshll.u32 %s202_s3, 4  ;;  %s86_s7 = int_to_ptr.vmem [resolvable:$true] %s85_s7 }
  0x2b   :  { %s96_s6 = sld [smem:[#allocation3 + $0x2]]  ;;  %v71_v8 = vld [vmem:[#allocation9 + $0x8] sm:$0xff]  ;;  %s170_s8 = scalar_lea.vmem %s86_s7, 256 }
  0x2c   :  { %p171_p1 = scmp.ne.s32.totalorder %s86_s7, %s170_s8  ;;  %p175_p2 = scmp.lt.s32.totalorder %s86_s7, %s86_s7 }
  0x2d   :  { %p176_p3 = scmp.lt.s32.totalorder %s170_s8, %s170_s8 }
  0x2f   :  { %v60_v1 = vstv %s55_s5  ;;  %p177_p4 = por %p176_p3, %p175_p2 }
  0x30   :  { %v61_v4 = vmul.f32 %v60_v1, %v58_v0  ;;  %v65_v5 = vstv %s95_s1  ;;  %v62_v11 = vmul.f32 %v60_v1, %v59_v6 }
  0x31   :  { %v66_v9 = vmul.f32 %v65_v5, %v63_v2  ;;  %v72_v10 = vstv %s96_s6  ;;  %v67_v12 = vmul.f32 %v65_v5, %v64_v7  ;;  %p178_p5 = pnand %p177_p4, %p171_p1 }
  0x32   :  { %v73_v13 = vmul.f32 %v72_v10, %v70_v3  ;;  %v74_v14 = vmul.f32 %v72_v10, %v71_v8 }
  0x33   :  { %v68_v15 = vadd.f32 %v66_v9, %v61_v4  ;;  %v69_v16 = vadd.f32 %v67_v12, %v62_v11 }
  0x35   :  { %v75_v17 = vadd.f32 %v73_v13, %v68_v15  ;;  %v76_v18 = vadd.f32 %v74_v14, %v69_v16 }
  0x37   :  { %77 = vst [vmem:[#allocation10] sm:$0xff] %v75_v17  ;;  %78 = vst [vmem:[#allocation10 + $0x8] sm:$0xff] %v76_v18 }
  0x38   :  { %181 = shalt.err (!%p178_p5)
}
  0x39   :  { %88 = dma.vmem_to_hbm [thread:$0]  %s86_s7, 256, %s247_s4, [#allocation6]  }
  0x3a   :  { %196 = dma.done.wait [#allocation6], 256  }
  0x3b   :  { %197 = vsyncadd [#allocation6], 4294967040 }
  0x3c   :  { %92 = vsyncpa [#allocation5], 1 }
  0x3d   :  { %93 = vsyncpa [#allocation8], 1 }
  0x3e   :  { %94 = vsyncpa [#allocation6], 1 }

</bundles_post_ra>
